<compile_context>
chip_gen: v7x
topology: tpu7x:2x2x1
jax: 0.10.0
libtpu: 0.0.40
codegen_flags: <defaults>
</compile_context>

<pallas_src>
import jax
import jax.numpy as jnp
from jax.experimental import pallas as pl
from jax.experimental.pallas import tpu as pltpu

PREPARED_IMAGE_SIZE_DEFAULT = 200  # -> centre point cp = (100, 100)

_LANE = 128
_SUBLANE = 8


def _round_up(x, m):
    return (x + m - 1) // m * m


def coords_kernel(x_ref, w1_ref, b1_ref, w2_ref, b2c_ref, out_ref, acc_ref):
    # grid = (m_blocks, k_blocks); axis 1 is the contraction over D.
    # x_ref:  (TM, TK)     bf16  flattened-image tile
    # w1_ref: (TK, Hp)     bf16  encoder layer-1 tile
    # b1_ref: (1, Hp)      f32
    # w2_ref: (Hp, Np)     bf16  head weights (lane-padded)
    # b2c_ref:(1, Np)      f32   head bias + centre point (pre-folded)
    # out_ref:(TM, Np)     f32   lane-dense output tile
    # acc_ref:(TM, Hp)     f32   hidden-layer accumulator (scratch)
    k = pl.program_id(1)

    @pl.when(k == 0)
    def _init():
        acc_ref[...] = jnp.zeros_like(acc_ref)

    acc_ref[...] += jnp.dot(x_ref[...], w1_ref[...],
                            preferred_element_type=jnp.float32)

    @pl.when(k == pl.num_programs(1) - 1)
    def _finalize():
        h = jnp.maximum(acc_ref[...] + b1_ref[...], 0.0)        # f32 ReLU on VPU
        z = jnp.dot(h.astype(w2_ref.dtype), w2_ref[...],
                    preferred_element_type=jnp.float32)
        out_ref[...] = z + b2c_ref[...]                          # bias + centre fused


def coords_net_forward(x_nchw, w1, b1, w2, b2, n_worm_points,
                       *, tile_m=128, tile_k_max=4096):
    bs = x_nchw.shape[0]
    d = x_nchw.shape[1] * x_nchw.shape[2] * x_nchw.shape[3]
    hidden = w1.shape[1]
    n_out = 2 * n_worm_points

    # Padded / tiled sizes.  TK is a multiple of 128 capped at tile_k_max so the
    # (TK, Hp) w1 tile + double buffering fits comfortably in scoped VMEM on
    # v5e/v6e and on v7x's smaller 64 MiB VMEM.
    tm = min(_round_up(bs, _SUBLANE), tile_m)
    bs_p = _round_up(bs, tm)
    tk = min(_round_up(d, _LANE), tile_k_max)
    d_p = _round_up(d, tk)
    h_p = _round_up(hidden, _LANE)
    n_p = _round_up(n_out, _LANE)

    # bf16 MXU operands (zero padding contributes exact zeros to accumulation).
    x_flat = x_nchw.reshape(bs, d).astype(jnp.bfloat16)
    x_pad = jnp.pad(x_flat, ((0, bs_p - bs), (0, d_p - d)))
    w1_pad = jnp.pad(w1.astype(jnp.bfloat16), ((0, d_p - d), (0, h_p - hidden)))
    w2_pad = jnp.pad(w2.astype(jnp.bfloat16), ((0, h_p - hidden), (0, n_p - n_out)))

    # f32 biases; fold the image-centre point into the head bias.
    b1_pad = jnp.pad(b1.astype(jnp.float32).reshape(1, -1),
                     ((0, 0), (0, h_p - hidden)))
    cx = float(PREPARED_IMAGE_SIZE_DEFAULT // 2)
    cp = jnp.tile(jnp.array([cx, cx], jnp.float32), n_worm_points)
    b2c = b2.astype(jnp.float32) + cp
    b2c_pad = jnp.pad(b2c.reshape(1, -1), ((0, 0), (0, n_p - n_out)))

    grid = (bs_p // tm, d_p // tk)

    # Explicit scoped-VMEM budget: double buffers for every streamed input,
    # the resident output tile, and the f32 accumulator, with ~1.5x headroom,
    # clamped to 32 MiB (safe for 64 MiB-VMEM v7x).
    vmem_est = (
        2 * (tm * tk + tk * h_p + h_p * n_p) * 2     # bf16 x/w1/w2 double buffers
        + 2 * (h_p + n_p) * 4                        # f32 biases
        + 2 * tm * n_p * 4                           # f32 output tile
        + tm * h_p * 4                               # f32 accumulator scratch
    )
    vmem_limit = int(min(max(vmem_est * 3 // 2, 4 << 20), 32 << 20))

    out_pad = pl.pallas_call(
        coords_kernel,
        out_shape=jax.ShapeDtypeStruct((bs_p, n_p), jnp.float32),
        grid_spec=pltpu.PrefetchScalarGridSpec(
            num_scalar_prefetch=0,
            grid=grid,
            in_specs=[
                pl.BlockSpec((tm, tk), lambda m, k: (m, k)),    # x tile
                pl.BlockSpec((tk, h_p), lambda m, k: (k, 0)),   # w1 tile
                pl.BlockSpec((1, h_p), lambda m, k: (0, 0)),    # b1
                pl.BlockSpec((h_p, n_p), lambda m, k: (0, 0)),  # w2
                pl.BlockSpec((1, n_p), lambda m, k: (0, 0)),    # b2 + centre
            ],
            out_specs=pl.BlockSpec((tm, n_p), lambda m, k: (m, 0)),
            scratch_shapes=[pltpu.VMEM((tm, h_p), jnp.float32)],
        ),
        compiler_params=pltpu.CompilerParams(
            dimension_semantics=("parallel", "arbitrary"),
            vmem_limit_bytes=vmem_limit,
        ),
    )(x_pad, w1_pad, b1_pad, w2_pad, b2c_pad)

    # CoordsNet: z = net(X).reshape(bs, n_worm_points, 2) + cp
    return out_pad[:bs, :n_out].reshape(bs, n_worm_points, 2)


if __name__ == "__main__":
    # small shapes consistent with the module
    bs, C, H, W = 2, 4, 16, 16
    hidden = 32
    n_worm_points = 8
    D = C * H * W

    key = jax.random.PRNGKey(0)
    kx, kw1, kb1, kw2, kb2 = jax.random.split(key, 5)

    x = jax.random.normal(kx, (bs, C, H, W), dtype=jnp.float32)
    w1 = jax.random.normal(kw1, (D, hidden), dtype=jnp.float32) * 0.02
    b1 = jax.random.normal(kb1, (hidden,), dtype=jnp.float32) * 0.02
    w2 = jax.random.normal(kw2, (hidden, 2 * n_worm_points), dtype=jnp.float32) * 0.02
    b2 = jax.random.normal(kb2, (2 * n_worm_points,), dtype=jnp.float32) * 0.02

    z = coords_net_forward(x, w1, b1, w2, b2, n_worm_points)
    jax.block_until_ready(z)

    # reference check in plain JAX (f32); kernel uses bf16 MXU operands with
    # f32 accumulation, so compare with a bf16-appropriate tolerance.
    x_flat = x.reshape(bs, D)
    h_ref = jnp.maximum(x_flat @ w1 + b1, 0.0)
    cp_ref = jnp.array([PREPARED_IMAGE_SIZE_DEFAULT // 2,
                        PREPARED_IMAGE_SIZE_DEFAULT // 2], dtype=jnp.float32)
    z_ref = (h_ref @ w2 + b2).reshape(bs, n_worm_points, 2) + cp_ref

    assert z.shape == (bs, n_worm_points, 2)
    max_err = float(jnp.max(jnp.abs(z - z_ref)))
    assert jnp.allclose(z, z_ref, atol=2e-2, rtol=1e-3), max_err

    print("KERNEL_OK")
</pallas_src>

<mosaic_0001>
module attributes {stable_mosaic.version = 11 : i64} {
  func.func @coords_kernel(%arg0: i32, %arg1: i32, %arg2: memref<8x1024xbf16, #tpu.memory_space<vmem>>, %arg3: memref<1024x128xbf16, #tpu.memory_space<vmem>>, %arg4: memref<1x128xf32, #tpu.memory_space<vmem>>, %arg5: memref<128x128xbf16, #tpu.memory_space<vmem>>, %arg6: memref<1x128xf32, #tpu.memory_space<vmem>>, %arg7: memref<8x128xf32, #tpu.memory_space<vmem>>, %arg8: memref<8x128xf32, #tpu.memory_space<vmem>>) attributes {dimension_semantics = [#tpu.dimension_semantics<parallel>, #tpu.dimension_semantics<arbitrary>], iteration_bounds = array<i64: 1, 1>, scalar_prefetch = 0 : i64, scratch_operands = 1 : i64, tpu.core_type = #tpu.core_type<tc>, window_params = [{transform_indices = @transform_0, window_bounds = array<i64: 8, 1024>}, {transform_indices = @transform_1, window_bounds = array<i64: 1024, 128>}, {pipeline_mode = #tpu.pipeline_mode<synchronous>, transform_indices = @transform_2, window_bounds = array<i64: 1, 128>}, {pipeline_mode = #tpu.pipeline_mode<synchronous>, transform_indices = @transform_3, window_bounds = array<i64: 128, 128>}, {pipeline_mode = #tpu.pipeline_mode<synchronous>, transform_indices = @transform_4, window_bounds = array<i64: 1, 128>}, {transform_indices = @transform_5, window_bounds = array<i64: 8, 128>}]} {
    %c0_i32 = arith.constant 0 : i32
    %0 = arith.cmpi eq, %arg1, %c0_i32 : i32
    %1 = arith.extui %0 : i1 to i32
    %c0_i32_0 = arith.constant 0 : i32
    %2 = arith.cmpi ne, %1, %c0_i32_0 : i32
    scf.if %2 {
      %cst_10 = arith.constant 0.000000e+00 : f32
      %12 = vector.broadcast %cst_10 : f32 to vector<8x128xf32>
      %c0_11 = arith.constant 0 : index
      %c0_12 = arith.constant 0 : index
      %13 = vector.load %arg8[%c0_11, %c0_12] : memref<8x128xf32, #tpu.memory_space<vmem>>, vector<8x128xf32>
      tpu.vector_store %arg8[%c0_11, %c0_12], %12 {strides = array<i32>} : memref<8x128xf32, #tpu.memory_space<vmem>>, vector<8x128xf32>,
    } else {
    }
    %c0 = arith.constant 0 : index
    %c0_1 = arith.constant 0 : index
    %3 = vector.load %arg8[%c0, %c0_1] : memref<8x128xf32, #tpu.memory_space<vmem>>, vector<8x128xf32>
    %c0_2 = arith.constant 0 : index
    %c0_3 = arith.constant 0 : index
    %4 = vector.load %arg2[%c0_2, %c0_3] : memref<8x1024xbf16, #tpu.memory_space<vmem>>, vector<8x1024xbf16>
    %c0_4 = arith.constant 0 : index
    %c0_5 = arith.constant 0 : index
    %5 = vector.load %arg3[%c0_4, %c0_5] : memref<1024x128xbf16, #tpu.memory_space<vmem>>, vector<1024x128xbf16>
    %cst = arith.constant dense<0.000000e+00> : vector<8x128xf32>
    %6 = tpu.matmul %4, %5, %cst {dimension_numbers = #tpu.dot_dimension_numbers<[1], [0], [0], [1], [0, 0, 1, 1], [], []>} : vector<8x1024xbf16>, vector<1024x128xbf16>, vector<8x128xf32> -> vector<8x128xf32>
    %7 = arith.addf %3, %6 : vector<8x128xf32>
    %c0_6 = arith.constant 0 : index
    %c0_7 = arith.constant 0 : index
    %8 = vector.load %arg8[%c0_6, %c0_7] : memref<8x128xf32, #tpu.memory_space<vmem>>, vector<8x128xf32>
    tpu.vector_store %arg8[%c0_6, %c0_7], %7 {strides = array<i32>} : memref<8x128xf32, #tpu.memory_space<vmem>>, vector<8x128xf32>,
    %c0_i32_8 = arith.constant 0 : i32
    %9 = arith.cmpi eq, %arg1, %c0_i32_8 : i32
    %10 = arith.extui %9 : i1 to i32
    %c0_i32_9 = arith.constant 0 : i32
    %11 = arith.cmpi ne, %10, %c0_i32_9 : i32
    scf.if %11 {
      %c0_10 = arith.constant 0 : index
      %c0_11 = arith.constant 0 : index
      %12 = vector.load %arg8[%c0_10, %c0_11] : memref<8x128xf32, #tpu.memory_space<vmem>>, vector<8x128xf32>
      %c0_12 = arith.constant 0 : index
      %c0_13 = arith.constant 0 : index
      %13 = vector.load %arg4[%c0_12, %c0_13] : memref<1x128xf32, #tpu.memory_space<vmem>>, vector<1x128xf32>
      %14 = vector.broadcast %13 : vector<1x128xf32> to vector<8x128xf32>
      %15 = arith.addf %12, %14 : vector<8x128xf32>
      %cst_14 = arith.constant 0.000000e+00 : f32
      %16 = vector.broadcast %cst_14 : f32 to vector<8x128xf32>
      %17 = arith.maximumf %15, %16 : vector<8x128xf32>
      %18 = arith.truncf %17 : vector<8x128xf32> to vector<8x128xbf16>
      %c0_15 = arith.constant 0 : index
      %c0_16 = arith.constant 0 : index
      %19 = vector.load %arg5[%c0_15, %c0_16] : memref<128x128xbf16, #tpu.memory_space<vmem>>, vector<128x128xbf16>
      %cst_17 = arith.constant dense<0.000000e+00> : vector<8x128xf32>
      %20 = tpu.matmul %18, %19, %cst_17 {dimension_numbers = #tpu.dot_dimension_numbers<[1], [0], [0], [1], [0, 0, 1, 1], [], []>} : vector<8x128xbf16>, vector<128x128xbf16>, vector<8x128xf32> -> vector<8x128xf32>
      %c0_18 = arith.constant 0 : index
      %c0_19 = arith.constant 0 : index
      %21 = vector.load %arg6[%c0_18, %c0_19] : memref<1x128xf32, #tpu.memory_space<vmem>>, vector<1x128xf32>
      %22 = vector.broadcast %21 : vector<1x128xf32> to vector<8x128xf32>
      %23 = arith.addf %20, %22 : vector<8x128xf32>
      %c0_20 = arith.constant 0 : index
      %c0_21 = arith.constant 0 : index
      %24 = vector.load %arg7[%c0_20, %c0_21] : memref<8x128xf32, #tpu.memory_space<vmem>>, vector<8x128xf32>
      tpu.vector_store %arg7[%c0_20, %c0_21], %23 {strides = array<i32>} : memref<8x128xf32, #tpu.memory_space<vmem>>, vector<8x128xf32>,
    } else {
    }
    return
  }
  func.func @transform_0(%arg0: i32, %arg1: i32) -> (i32, i32) {
    %c0_i32 = arith.constant 0 : i32
    return %arg0, %arg1 : i32, i32
  }
  func.func @transform_1(%arg0: i32, %arg1: i32) -> (i32, i32) {
    %c0_i32 = arith.constant 0 : i32
    %c0_i32_0 = arith.constant 0 : i32
    return %arg1, %c0_i32 : i32, i32
  }
  func.func @transform_2(%arg0: i32, %arg1: i32) -> (i32, i32) {
    %c0_i32 = arith.constant 0 : i32
    %c0_i32_0 = arith.constant 0 : i32
    %c0_i32_1 = arith.constant 0 : i32
    return %c0_i32, %c0_i32_0 : i32, i32
  }
  func.func @transform_3(%arg0: i32, %arg1: i32) -> (i32, i32) {
    %c0_i32 = arith.constant 0 : i32
    %c0_i32_0 = arith.constant 0 : i32
    %c0_i32_1 = arith.constant 0 : i32
    return %c0_i32, %c0_i32_0 : i32, i32
  }
  func.func @transform_4(%arg0: i32, %arg1: i32) -> (i32, i32) {
    %c0_i32 = arith.constant 0 : i32
    %c0_i32_0 = arith.constant 0 : i32
    %c0_i32_1 = arith.constant 0 : i32
    return %c0_i32, %c0_i32_0 : i32, i32
  }
  func.func @transform_5(%arg0: i32, %arg1: i32) -> (i32, i32) {
    %c0_i32 = arith.constant 0 : i32
    %c0_i32_0 = arith.constant 0 : i32
    return %arg0, %c0_i32 : i32, i32
  }
}

</mosaic_0001>

<bundles_post_ra>
// kernel: tpu_custom_call.1
= control target key start
LH: loop header
LB: loop body
LE: loop exit
PB: predicated region body
PF: predicated region fallthrough
CT: control target
= control target key end

     0   :  { %10 = vsyncpa [#allocation4], 0  ;;  %s1394_s0 = inlined_call_operand.hbm [shape: bf16[8,1024], index: 0, kind: input, shape index: {}]   ;;  %s1395_s1 = inlined_call_operand.hbm [shape: bf16[1024,128], index: 1, kind: input, shape index: {}]   ;;  %s1396_s2 = inlined_call_operand.vmem [shape: f32[1,128], index: 2, kind: input, shape index: {}]   ;;  %s1397_s3 = inlined_call_operand.hbm [shape: bf16[128,128], index: 3, kind: input, shape index: {}]   ;;  %s1398_s4 = inlined_call_operand.vmem [shape: f32[1,128], index: 4, kind: input, shape index: {}]   ;;  %s1399_s5 = inlined_call_operand.hbm [shape: f32[8,128], index: 5, kind: output, shape index: {}]  }
   0x1   :  { %11 = vsyncpa [#allocation7], 0 }
   0x2   :  { %12 = vsyncpa [#allocation5], 0  ;;  %s1296_s18 = smov [#allocation6]   ;;  %s1202_s22 = scalar_lea.hbm %s1395_s1, 8192 }
   0x3   :  { %s28_s19 = sshll.u32 %s1296_s18, 4  ;;  %p1203_p0 = scmp.ne.s32.totalorder %s1395_s1, %s1202_s22  ;;  %s29_s19 = int_to_ptr.vmem [resolvable:$true] %s28_s19 }
   0x4   :  { %p1206_p1 = scmp.lt.u32.totalorder %s1202_s22, %s1395_s1 }
   0x6   :  { %p1208_p2 = pnand %p1206_p1, %p1203_p0 }
   0x8   :  { %1211 = shalt.err (!%p1208_p2)
}
   0x9   :  { %s1212_s27 = scalar_lea.vmem %s29_s19, 8192  ;;  %p1217_p4 = scmp.lt.s32.totalorder %s29_s19, %s29_s19 }
   0xa   :  { %p1213_p3 = scmp.ne.s32.totalorder %s29_s19, %s1212_s27  ;;  %p1218_p5 = scmp.lt.s32.totalorder %s1212_s27, %s1212_s27 }
   0xc   :  { %p1219_p6 = por %p1218_p5, %p1217_p4 }
   0xe   :  { %p1220_p7 = pnand %p1219_p6, %p1213_p3 }
  0x10   :  { %1223 = shalt.err (!%p1220_p7)
}
  0x11   :  { %s1297_s28 = smov 64   ;;  %s1298_s29 = smov 4  }
  0x12   :  { %34 = dma.hbm_to_vmem [thread:$0]  %s1395_s1, 8192, %s29_s19, [#allocation7], %s1297_s28, %s1297_s28, %s1298_s29  }
  0x13   :  { %s1299_s7 = smov [#allocation3]   ;;  %s1300_s9 = smov [#allocation8]  }
  0x14   :  { %s19_s8 = sshll.u32 %s1299_s7, 4  ;;  %s42_s10 = sshll.u32 %s1300_s9, 4  ;;  %s20_s8 = int_to_ptr.vmem [resolvable:$true] %s19_s8  ;;  %s43_s10 = int_to_ptr.vmem [resolvable:$true] %s42_s10 }
  0x15   :  { %s1224_s13 = scalar_lea.hbm %s1394_s0, 512 }
  0x16   :  { %p1225_p8 = scmp.ne.s32.totalorder %s1394_s0, %s1224_s13  ;;  %p1228_p9 = scmp.lt.u32.totalorder %s1224_s13, %s1394_s0 }
  0x18   :  { %p1230_p10 = pnand %p1228_p9, %p1225_p8 }
  0x1a   :  { %1233 = shalt.err (!%p1230_p10)
}
  0x1b   :  { %s1234_s1 = scalar_lea.vmem %s20_s8, 512  ;;  %p1239_p12 = scmp.lt.s32.totalorder %s20_s8, %s20_s8 }
  0x1c   :  { %p1235_p11 = scmp.ne.s32.totalorder %s20_s8, %s1234_s1  ;;  %p1240_p13 = scmp.lt.s32.totalorder %s1234_s1, %s1234_s1 }
  0x1e   :  { %p1241_p0 = por %p1240_p13, %p1239_p12 }
  0x20   :  { %p1242_p1 = pnand %p1241_p0, %p1235_p11 }
  0x22   :  { %1245 = shalt.err (!%p1242_p1)
}
  0x23   :  { %22 = dma.hbm_to_vmem [thread:$0]  %s1394_s0, 512, %s20_s8, [#allocation4]  }
  0x24   :  { %s1246_s22 = scalar_lea.hbm %s1397_s3, 1024 }
  0x25   :  { %p1247_p2 = scmp.ne.s32.totalorder %s1397_s3, %s1246_s22  ;;  %p1250_p3 = scmp.lt.u32.totalorder %s1246_s22, %s1397_s3 }
  0x27   :  { %p1252_p4 = pnand %p1250_p3, %p1247_p2 }
  0x29   :  { %1255 = shalt.err (!%p1252_p4)
}
  0x2a   :  { %s1256_s27 = scalar_lea.vmem %s43_s10, 1024  ;;  %p1261_p6 = scmp.lt.s32.totalorder %s43_s10, %s43_s10 }
  0x2b   :  { %p1257_p5 = scmp.ne.s32.totalorder %s43_s10, %s1256_s27  ;;  %p1262_p7 = scmp.lt.s32.totalorder %s1256_s27, %s1256_s27 }
  0x2d   :  { %p1263_p8 = por %p1262_p7, %p1261_p6 }
  0x2f   :  { %p1264_p9 = pnand %p1263_p8, %p1257_p5 }
  0x31   :  { %1267 = shalt.err (!%p1264_p9)
}
  0x32   :  { %48 = dma.hbm_to_vmem [thread:$0]  %s1397_s3, 1024, %s43_s10, [#allocation7], %s1297_s28, %s1297_s28, %s1298_s29  }
  0x33   :  { %1290 = dma.done.wait [#allocation4], 512  }
  0x34   :  { %1291 = vsyncadd [#allocation4], 4294966784 }
  0x35   :  { %1292 = dma.done.wait [#allocation7], 9216  }
  0x36   :  { %1293 = vsyncadd [#allocation7], 4294958080  ;;  %v1122_v0 = vld [vmem:[#allocation6 + $0x40] sm:$0xff]   ;;  %v1126_v4 = vld [vmem:[#allocation6 + $0x48] sm:$0xff]   ;;  %vm1302_vm0 = vmmov 0   ;;  %s1303_s7 = smov [#allocation9]  }
  0x37   :  { %v1123_v1 = vld [vmem:[#allocation6 + $0xc0] sm:$0xff]   ;;  %997 = vmatprep.subr.bf16.mxu0 %v1122_v0  ;;  %v1127_v5 = vld [vmem:[#allocation6 + $0xc8] sm:$0xff]   ;;  %v1130_v8 = vld [vmem:[#allocation6 + $0x50] sm:$0xff]   ;;  %s905_s8 = sshll.u32 %s1303_s7, 4  ;;  %s906_s8 = int_to_ptr.vmem [resolvable:$true] %s905_s8 }
  0x38   :  { %v1124_v2 = vld [vmem:[#allocation6] sm:$0xff]   ;;  %1019 = vmatprep.subr.bf16.mxu1 %v1123_v1  ;;  %v1128_v6 = vld [vmem:[#allocation6 + $0x8] sm:$0xff]   ;;  %v1131_v9 = vld [vmem:[#allocation6 + $0xd0] sm:$0xff]   ;;  %s1268_s9 = scalar_lea.vmem %s906_s8, 128  ;;  %p1273_p11 = scmp.lt.s32.totalorder %s906_s8, %s906_s8 }
  0x39   :  { %v1125_v3 = vld [vmem:[#allocation6 + $0x80] sm:$0xff]   ;;  %998 = vmatpush3.bf16.msra.mxu0 %v1124_v2  ;;  %v1129_v7 = vld [vmem:[#allocation6 + $0x88] sm:$0xff]   ;;  %v1132_v10 = vld [vmem:[#allocation6 + $0x10] sm:$0xff]   ;;  %p1269_p10 = scmp.ne.s32.totalorder %s906_s8, %s1268_s9  ;;  %p1274_p12 = scmp.lt.s32.totalorder %s1268_s9, %s1268_s9 }
  0x3a   :  { %1020 = vmatpush3.bf16.msra.mxu1 %v1125_v3  ;;  %999 = vmatprep.subr.bf16.mxu0 %v1126_v4  ;;  %v1133_v11 = vld [vmem:[#allocation6 + $0x90] sm:$0xff]   ;;  %v1134_v12 = vld [vmem:[#allocation6 + $0x58] sm:$0xff]   ;;  %v1138_v16 = vld [vmem:[#allocation6 + $0x60] sm:$0xff]  }
  0x3b   :  { %1021 = vmatprep.subr.bf16.mxu1 %v1127_v5  ;;  %v1135_v13 = vld [vmem:[#allocation6 + $0xd8] sm:$0xff]   ;;  %v1139_v17 = vld [vmem:[#allocation6 + $0xe0] sm:$0xff]   ;;  %v1142_v20 = vld [vmem:[#allocation6 + $0x68] sm:$0xff]   ;;  %p1275_p13 = por %p1274_p12, %p1273_p11 }
  0x3c   :  { %v1136_v14 = vld [vmem:[#allocation6 + $0x18] sm:$0xff]   ;;  %v1140_v18 = vld [vmem:[#allocation6 + $0x20] sm:$0xff]   ;;  %v1143_v21 = vld [vmem:[#allocation6 + $0xe8] sm:$0xff]  }
  0x3d   :  { %1000 = vmatpush3.bf16.msra.mxu0 %v1128_v6  ;;  %v1137_v15 = vld [vmem:[#allocation6 + $0x98] sm:$0xff]   ;;  %v1141_v19 = vld [vmem:[#allocation6 + $0xa0] sm:$0xff]   ;;  %v1144_v22 = vld [vmem:[#allocation6 + $0x28] sm:$0xff]   ;;  %p1276_p0 = pnand %p1275_p13, %p1269_p10 }
  0x3e   :  { %1022 = vmatpush3.bf16.msra.mxu1 %v1129_v7  ;;  %1001 = vmatprep.subr.bf16.mxu0 %v1130_v8  ;;  %v1145_v23 = vld [vmem:[#allocation6 + $0xa8] sm:$0xff]   ;;  %v1146_v24 = vld [vmem:[#allocation6 + $0x70] sm:$0xff]   ;;  %v1150_v28 = vld [vmem:[#allocation6 + $0x78] sm:$0xff]  }
  0x3f   :  { %1023 = vmatprep.subr.bf16.mxu1 %v1131_v9  ;;  %v1147_v25 = vld [vmem:[#allocation6 + $0xf0] sm:$0xff]   ;;  %v1151_v29 = vld [vmem:[#allocation6 + $0xf8] sm:$0xff]   ;;  %v67_v32 = vld [vmem:[#allocation3] sm:$0xff] }
  0x40   :  { %v1148_v26 = vld [vmem:[#allocation6 + $0x30] sm:$0xff]   ;;  %v1152_v30 = vld [vmem:[#allocation6 + $0x38] sm:$0xff]   ;;  %v68_v33 = vld [vmem:[#allocation3 + $0x8] sm:$0xff]  ;;  %v915_v34 = vcombine.low %v67_v32, %v67_v32  ;;  %v916_v35 = vcombine.high %v67_v32, %v67_v32 }
  0x41   :  { %1002 = vmatpush3.bf16.msra.mxu0 %v1132_v10  ;;  %v1149_v27 = vld [vmem:[#allocation6 + $0xb0] sm:$0xff]   ;;  %v1153_v31 = vld [vmem:[#allocation6 + $0xb8] sm:$0xff]   ;;  %v917_v36 = vcombine.low %v68_v33, %v68_v33  ;;  %v918_v37 = vcombine.high %v68_v33, %v68_v33  ;;  %v1158_v38 = vld [vmem:[#allocation6 + $0x140] sm:$0xff]  }
  0x42   :  { %1024 = vmatpush3.bf16.msra.mxu1 %v1133_v11  ;;  %1003 = vmatprep.subr.bf16.mxu0 %v1134_v12  ;;  %v1159_v39 = vld [vmem:[#allocation6 + $0x1c0] sm:$0xff]   ;;  %v1162_v42 = vld [vmem:[#allocation6 + $0x148] sm:$0xff]   ;;  %v1166_v46 = vld [vmem:[#allocation6 + $0x150] sm:$0xff]  }
  0x43   :  { %1025 = vmatprep.subr.bf16.mxu1 %v1135_v13  ;;  %643 = vmatprep.mubr.bf16.mxu0 %v916_v35  ;;  %v1160_v40 = vld [vmem:[#allocation6 + $0x100] sm:$0xff]   ;;  %v1163_v43 = vld [vmem:[#allocation6 + $0x1c8] sm:$0xff]   ;;  %v1167_v47 = vld [vmem:[#allocation6 + $0x1d0] sm:$0xff]   ;;  %v1301_v13 = vmov 0.0  }
  0x44   :  { %683 = vmatprep.mubr.bf16.mxu1 %v918_v37  ;;  %v1161_v41 = vld [vmem:[#allocation6 + $0x180] sm:$0xff]   ;;  %v1164_v44 = vld [vmem:[#allocation6 + $0x108] sm:$0xff]   ;;  %v1168_v48 = vld [vmem:[#allocation6 + $0x110] sm:$0xff]  }
  0x45   :  { %1004 = vmatpush3.bf16.msra.mxu0 %v1136_v14  ;;  %v1165_v45 = vld [vmem:[#allocation6 + $0x188] sm:$0xff]   ;;  %v1169_v49 = vld [vmem:[#allocation6 + $0x190] sm:$0xff]   ;;  %v1170_v50 = vld [vmem:[#allocation6 + $0x158] sm:$0xff]  }
  0x46   :  { %1026 = vmatpush3.bf16.msra.mxu1 %v1137_v15  ;;  %1005 = vmatprep.subr.bf16.mxu0 %v1138_v16  ;;  %v1171_v51 = vld [vmem:[#allocation6 + $0x1d8] sm:$0xff]   ;;  %v1174_v54 = vld [vmem:[#allocation6 + $0x160] sm:$0xff]   ;;  %v1178_v58 = vld [vmem:[#allocation6 + $0x168] sm:$0xff]  }
  0x47   :  { %1027 = vmatprep.subr.bf16.mxu1 %v1139_v17  ;;  %v1172_v52 = vld [vmem:[#allocation6 + $0x118] sm:$0xff]   ;;  %v1175_v55 = vld [vmem:[#allocation6 + $0x1e0] sm:$0xff]   ;;  %v1179_v59 = vld [vmem:[#allocation6 + $0x1e8] sm:$0xff]  }
  0x48   :  { %v1173_v53 = vld [vmem:[#allocation6 + $0x198] sm:$0xff]   ;;  %v1176_v56 = vld [vmem:[#allocation6 + $0x120] sm:$0xff]   ;;  %v1180_v60 = vld [vmem:[#allocation6 + $0x128] sm:$0xff]  }
  0x49   :  { %1006 = vmatpush3.bf16.msra.mxu0 %v1140_v18  ;;  %v1177_v57 = vld [vmem:[#allocation6 + $0x1a0] sm:$0xff]   ;;  %v1181_v61 = vld [vmem:[#allocation6 + $0x1a8] sm:$0xff]   ;;  %v1182_v62 = vld [vmem:[#allocation6 + $0x170] sm:$0xff]  }
  0x4a   :  { %1028 = vmatpush3.bf16.msra.mxu1 %v1141_v19  ;;  %1007 = vmatprep.subr.bf16.mxu0 %v1142_v20  ;;  %v1183_v63 = vld [vmem:[#allocation6 + $0x1f0] sm:$0xff]   ;;  %v1186_v2 = vld [vmem:[#allocation6 + $0x178] sm:$0xff]   ;;  %v1194_v12 = vld [vmem:[#allocation8] sm:$0xff]  }
  0x4b   :  { %1029 = vmatprep.subr.bf16.mxu1 %v1143_v21  ;;  %v1184_v0 = vld [vmem:[#allocation6 + $0x130] sm:$0xff]   ;;  %v1187_v3 = vld [vmem:[#allocation6 + $0x1f8] sm:$0xff]   ;;  %v1195_v14 = vld [vmem:[#allocation8 + $0x8] sm:$0xff]  }
  0x4c   :  { %v1185_v1 = vld [vmem:[#allocation6 + $0x1b0] sm:$0xff]   ;;  %v1188_v4 = vld [vmem:[#allocation6 + $0x138] sm:$0xff]   ;;  %v1198_v17 = vld [vmem:[#allocation8 + $0x20] sm:$0xff]  }
  0x4d   :  { %1008 = vmatpush3.bf16.msra.mxu0 %v1144_v22  ;;  %v1189_v5 = vld [vmem:[#allocation6 + $0x1b8] sm:$0xff]   ;;  %v69_v6 = vld [vmem:[#allocation3 + $0x10] sm:$0xff]  ;;  %v1199_v18 = vld [vmem:[#allocation8 + $0x28] sm:$0xff]  }
  0x4e   :  { %1030 = vmatpush3.bf16.msra.mxu1 %v1145_v23  ;;  %1009 = vmatprep.subr.bf16.mxu0 %v1146_v24  ;;  %v919_v7 = vcombine.low %v69_v6, %v69_v6  ;;  %v920_v8 = vcombine.high %v69_v6, %v69_v6  ;;  %v70_v9 = vld [vmem:[#allocation3 + $0x18] sm:$0xff]  ;;  %v1196_v15 = vld [vmem:[#allocation8 + $0x10] sm:$0xff]  }
  0x4f   :  { %1031 = vmatprep.subr.bf16.mxu1 %v1147_v25  ;;  %v921_v10 = vcombine.low %v70_v9, %v70_v9  ;;  %v922_v11 = vcombine.high %v70_v9, %v70_v9  ;;  %v1197_v16 = vld [vmem:[#allocation8 + $0x18] sm:$0xff]   ;;  %v1200_v19 = vld [vmem:[#allocation8 + $0x30] sm:$0xff]  }
  0x50   :  { %v1201_v20 = vld [vmem:[#allocation8 + $0x38] sm:$0xff]  }
  0x51   :  { %1010 = vmatpush3.bf16.msra.mxu0 %v1148_v26 }
  0x52   :  { %1032 = vmatpush3.bf16.msra.mxu1 %v1149_v27  ;;  %1011 = vmatprep.subr.bf16.mxu0 %v1150_v28 }
  0x53   :  { %1033 = vmatprep.subr.bf16.mxu1 %v1151_v29 }
  0x55   :  { %1012 = vmatpush3.bf16.msra.mxu0 %v1152_v30 }
  0x56   :  { %1034 = vmatpush3.bf16.msra.mxu1 %v1153_v31  ;;  %1041 = vmatprep.subr.bf16.mxu0 %v1158_v38 }
  0x57   :  { %1063 = vmatprep.subr.bf16.mxu1 %v1159_v39 }
  0x58   :  { %644 = vmatmul.mubr.bf16.vlgmr.msra.gmra.mrb[0].mxu0 %v915_v34 }
  0x59   :  { %684 = vmatmul.mubr.bf16.vlgmr.msra.gmra.mrb[0].mxu1 %v917_v36  ;;  %1042 = vmatpush3.bf16.msra.mxu0 %v1160_v40 }
  0x5a   :  { %1064 = vmatpush3.bf16.msra.mxu1 %v1161_v41  ;;  %1043 = vmatprep.subr.bf16.mxu0 %v1162_v42 }
  0x5b   :  { %1065 = vmatprep.subr.bf16.mxu1 %v1163_v43  ;;  %723 = vmatprep.mubr.bf16.mxu0 %v920_v8  ;;  %v987_v43 = vld [vmem:[%s1396_s2] ss:$0 sm:$0xff] }
  0x5c   :  { %763 = vmatprep.mubr.bf16.mxu1 %v922_v11 }
  0x5d   :  { %1044 = vmatpush3.bf16.msra.mxu0 %v1164_v44 }
  0x5e   :  { %1066 = vmatpush3.bf16.msra.mxu1 %v1165_v45  ;;  %1045 = vmatprep.subr.bf16.mxu0 %v1166_v46 }
  0x5f   :  { %1067 = vmatprep.subr.bf16.mxu1 %v1167_v47 }
  0x61   :  { %1046 = vmatpush3.bf16.msra.mxu0 %v1168_v48  ;;  %v988_v48 = vld [vmem:[%s1398_s4] ss:$0 sm:$0xff] }
  0x62   :  { %1068 = vmatpush3.bf16.msra.mxu1 %v1169_v49  ;;  %1047 = vmatprep.subr.bf16.mxu0 %v1170_v50 }
  0x63   :  { %1069 = vmatprep.subr.bf16.mxu1 %v1171_v51 }
  0x65   :  { %1048 = vmatpush3.bf16.msra.mxu0 %v1172_v52 }
  0x66   :  { %1070 = vmatpush3.bf16.msra.mxu1 %v1173_v53  ;;  %1049 = vmatprep.subr.bf16.mxu0 %v1174_v54 }
  0x67   :  { %1071 = vmatprep.subr.bf16.mxu1 %v1175_v55 }
  0x69   :  { %1050 = vmatpush3.bf16.msra.mxu0 %v1176_v56 }
  0x6a   :  { %1072 = vmatpush3.bf16.msra.mxu1 %v1177_v57  ;;  %1051 = vmatprep.subr.bf16.mxu0 %v1178_v58 }
  0x6b   :  { %1073 = vmatprep.subr.bf16.mxu1 %v1179_v59 }
  0x6d   :  { %1052 = vmatpush3.bf16.msra.mxu0 %v1180_v60 }
  0x6e   :  { %1074 = vmatpush3.bf16.msra.mxu1 %v1181_v61  ;;  %1053 = vmatprep.subr.bf16.mxu0 %v1182_v62 }
  0x6f   :  { %1075 = vmatprep.subr.bf16.mxu1 %v1183_v63 }
  0x71   :  { %1054 = vmatpush3.bf16.msra.mxu0 %v1184_v0 }
  0x72   :  { %1076 = vmatpush3.bf16.msra.mxu1 %v1185_v1  ;;  %1055 = vmatprep.subr.bf16.mxu0 %v1186_v2 }
  0x73   :  { %1077 = vmatprep.subr.bf16.mxu1 %v1187_v3 }
  0x75   :  { %1056 = vmatpush3.bf16.msra.mxu0 %v1188_v4 }
  0x76   :  { %1078 = vmatpush3.bf16.msra.mxu1 %v1189_v5  ;;  %1094 = vmatprep.subr.bf16.mxu0 %v1301_v13 }
  0x78   :  { %724 = vmatmul.mubr.bf16.vlgmr.msra.gmra.mrb[4].mxu0 %v919_v7 }
  0x79   :  { %764 = vmatmul.mubr.bf16.vlgmr.msra.gmra.mrb[4].mxu1 %v921_v10  ;;  %1095 = vmatpush3.bf16.msra.mxu0 %v1194_v12 }
  0x7a   :  { %1096 = vmatprep.subr.bf16.mxu0 %v1301_v13  ;;  %1110 = vmatprep.mubr.msk.bf16.mxu0 %vm1302_vm0, %v1301_v13 }
  0x7d   :  { %1097 = vmatpush3.bf16.msra.mxu0 %v1195_v14 }
  0x7e   :  { %1098 = vmatprep.subr.bf16.mxu0 %v1301_v13 }
  0x81   :  { %1099 = vmatpush3.bf16.msra.mxu0 %v1196_v15 }
  0x82   :  { %1100 = vmatprep.subr.bf16.mxu0 %v1301_v13 }
  0x85   :  { %1101 = vmatpush3.bf16.msra.mxu0 %v1197_v16 }
  0x86   :  { %1102 = vmatprep.subr.bf16.mxu0 %v1301_v13 }
  0x89   :  { %1103 = vmatpush3.bf16.msra.mxu0 %v1198_v17 }
  0x8a   :  { %1104 = vmatprep.subr.bf16.mxu0 %v1301_v13 }
  0x8d   :  { %1105 = vmatpush3.bf16.msra.mxu0 %v1199_v18 }
  0x8e   :  { %1106 = vmatprep.subr.bf16.mxu0 %v1301_v13 }
  0x91   :  { %1107 = vmatpush3.bf16.msra.mxu0 %v1200_v19 }
  0x92   :  { %1108 = vmatprep.subr.bf16.mxu0 %v1301_v13 }
  0x95   :  { %1109 = vmatpush3.bf16.msra.mxu0 %v1201_v20 }
 0x12b   :  { %v1013_v21 = vpop.f32.mrb[0].mxu0 }
 0x12c   :  { %v1035_v22 = vpop.f32.mrb[0].mxu1  ;;  %v1014_v23 = vpop.f32.mrb[1].mxu0 }
 0x12d   :  { %v1036_v24 = vpop.f32.mrb[1].mxu1  ;;  %v1015_v25 = vadd.f32 %v1014_v23, %v1013_v21  ;;  %v1016_v27 = vpop.f32.mrb[2].mxu0 }
 0x12e   :  { %v1037_v26 = vadd.f32 %v1036_v24, %v1035_v22  ;;  %v1038_v28 = vpop.f32.mrb[2].mxu1  ;;  %v1017_v29 = vpop.f32.mrb[3].mxu0 }
 0x12f   :  { %v1039_v30 = vpop.f32.mrb[3].mxu1 }
 0x130   :  { %v686_v31 = vadd.f32 %v1037_v26, %v1015_v25 }
 0x14b   :  { %v1057_v32 = vpop.f32.mrb[4].mxu0 }
 0x14c   :  { %v1079_v33 = vpop.f32.mrb[4].mxu1  ;;  %v1058_v34 = vpop.f32.mrb[5].mxu0 }
 0x14d   :  { %v1080_v35 = vpop.f32.mrb[5].mxu1  ;;  %v1059_v36 = vadd.f32 %v1058_v34, %v1057_v32  ;;  %v1060_v38 = vpop.f32.mrb[6].mxu0 }
 0x14e   :  { %v1081_v37 = vadd.f32 %v1080_v35, %v1079_v33  ;;  %v1082_v39 = vpop.f32.mrb[6].mxu1  ;;  %v1061_v40 = vpop.f32.mrb[7].mxu0 }
 0x14f   :  { %v1083_v41 = vpop.f32.mrb[7].mxu1  ;;  %v726_v42 = vadd.f32 %v1059_v36, %v686_v31 }
 0x151   :  { %v766_v44 = vadd.f32 %v1081_v37, %v726_v42 }
 0x153   :  { %v784_v45 = vadd.f32 %v987_v43, %v766_v44 }
 0x155   :  { %v785_v46 = vmax.f32 %v784_v45, 0.0 }
 0x157   :  { %v786_v47 = vpack.c.bf16 %v785_v46, %v785_v46 }
 0x159   :  { %1111 = vmatmul.mubr.bf16.vlgmr.msra.gmra.mrb[8].mxu0 %v786_v47 }
 0x22c   :  { %v892_v49 = vpop.f32.mrb[8].mxu0 }
 0x22d   :  { %v893_v50 = vadd.f32 %v988_v48, %v892_v49  ;;  %v1112_v51 = vpop.f32.mrb[9].mxu0 }
 0x22e   :  { %v895_v52 = vpop.f32.mrb[10].mxu0 }
 0x22f   :  { %898 = vst [vmem:[#allocation9] sm:$0xff] %v893_v50  ;;  %v1113_v53 = vpop.f32.mrb[11].mxu0 }
 0x230   :  { %1279 = shalt.err (!%p1276_p0)
}
 0x231   :  { %s1280_s4 = scalar_lea.hbm %s1399_s5, 128 }
 0x232   :  { %p1281_p1 = scmp.ne.s32.totalorder %s1399_s5, %s1280_s4  ;;  %p1284_p2 = scmp.lt.u32.totalorder %s1280_s4, %s1399_s5 }
 0x234   :  { %p1286_p3 = pnand %p1284_p2, %p1281_p1 }
 0x236   :  { %1289 = shalt.err (!%p1286_p3)
}
 0x237   :  { %908 = dma.vmem_to_hbm [thread:$0]  %s906_s8, 128, %s1399_s5, [#allocation5]  }
 0x238   :  { %1294 = dma.done.wait [#allocation5], 128  }
 0x239   :  { %1295 = vsyncadd [#allocation5], 4294967168 }
 0x23a   :  { %912 = vsyncpa [#allocation4], 1 }
 0x23b   :  { %913 = vsyncpa [#allocation7], 1 }
 0x23c   :  { %914 = vsyncpa [#allocation5], 1 }

</bundles_post_ra>
